<compile_context>
chip_gen: v7x
topology: tpu7x:2x2x1
jax: 0.10.0
libtpu: 0.0.40
codegen_flags: <defaults>
</compile_context>

<pallas_src>
import jax
import jax.numpy as jnp
from jax.experimental import pallas as pl
from jax.experimental.pallas import tpu as pltpu

INPUT_DIM = 1080
HIDDEN = 64                  # forward() hard-codes the final reshape to 64
NGATES = 3                   # [i | o | g]; f-gate dropped (multiplies c0 == 0)
GATE_DIM = NGATES * HIDDEN   # 192


def _cdiv(a, b):
    return (a + b - 1) // b


def _round_up(x, m):
    return _cdiv(x, m) * m


def lstm_kernel(x_ref, w0_ref, b0_ref, w1_ref, b1_ref, h_ref, c_ref):
    H = HIDDEN

    # Cast the f32 x tile to bf16 in-kernel (hidden under DMA / MXU).
    x_bf = x_ref[...].astype(jnp.bfloat16)

    # ---- layer 0: gates = x @ W_ih0^T + (b_ih0 + b_hh0); recurrent term == 0 ----
    gates0 = (
        jnp.dot(x_bf, w0_ref[...], preferred_element_type=jnp.float32)
        + b0_ref[...]
    )
    # gate order [i | o | g]: one full 128-lane sigmoid sweep + one 64-lane tanh
    sig0 = jax.nn.sigmoid(gates0[:, 0:2 * H])
    i0 = sig0[:, 0:H]
    o0 = sig0[:, H:2 * H]
    g0 = jnp.tanh(gates0[:, 2 * H:3 * H])
    c1 = i0 * g0                       # f-gate * c0 == 0, omitted
    h1 = o0 * jnp.tanh(c1)             # gate math kept in f32 (v5e-friendly)

    # ---- layer 1: input is h1; its own (h0, c0) == 0 as well ----
    gates1 = (
        jnp.dot(h1.astype(jnp.bfloat16), w1_ref[...],
                preferred_element_type=jnp.float32)
        + b1_ref[...]
    )
    sig1 = jax.nn.sigmoid(gates1[:, 0:2 * H])
    i1 = sig1[:, 0:H]
    o1 = sig1[:, H:2 * H]
    g1 = jnp.tanh(gates1[:, 2 * H:3 * H])
    c2 = i1 * g1
    h2 = o1 * jnp.tanh(c2)

    h_ref[...] = h2
    c_ref[...] = c2


def lstm_forward(x, w0_t, b0, w1_t, b1, *, tile_b=2048):
    """x: (B, ...) flattening to (B, 1080). Returns (h, c), each (B, 1, 64) f32."""
    B = x.shape[0]
    x2 = x.reshape(B, -1).astype(jnp.float32)
    assert x2.shape[1] == INPUT_DIM

    # Adaptive tiling: choose the number of tiles first, then a tile size that
    # keeps batch padding within 8-row (sublane) granularity per tile.
    n_tiles = _cdiv(B, tile_b)
    if n_tiles < 2 and B >= 1024:
        n_tiles = 2            # keep both v7x TensorCores fed via the parallel axis
    tb = _round_up(_cdiv(B, n_tiles), 8)
    b_pad = n_tiles * tb
    if b_pad != B:
        x2 = jnp.pad(x2, ((0, b_pad - B), (0, 0)))

    h, c = pl.pallas_call(
        lstm_kernel,
        grid=(n_tiles,),
        out_shape=(
            jax.ShapeDtypeStruct((b_pad, HIDDEN), jnp.float32),
            jax.ShapeDtypeStruct((b_pad, HIDDEN), jnp.float32),
        ),
        in_specs=[
            pl.BlockSpec((tb, INPUT_DIM), lambda i: (i, 0)),          # x tile (f32)
            pl.BlockSpec((INPUT_DIM, GATE_DIM), lambda i: (0, 0)),    # resident W0 (bf16)
            pl.BlockSpec((1, GATE_DIM), lambda i: (0, 0)),            # resident b0
            pl.BlockSpec((HIDDEN, GATE_DIM), lambda i: (0, 0)),       # resident W1 (bf16)
            pl.BlockSpec((1, GATE_DIM), lambda i: (0, 0)),            # resident b1
        ],
        out_specs=(
            pl.BlockSpec((tb, HIDDEN), lambda i: (i, 0)),
            pl.BlockSpec((tb, HIDDEN), lambda i: (i, 0)),
        ),
        compiler_params=pltpu.CompilerParams(
            dimension_semantics=("parallel",),
            vmem_limit_bytes=32 << 20,
        ),
    )(x2, w0_t, b0, w1_t, b1)

    if b_pad != B:
        h = h[:B]
        c = c[:B]
    # matches: hidden[1].reshape(-1,1,64), cell[1].reshape(-1,1,64)
    return h.reshape(-1, 1, HIDDEN), c.reshape(-1, 1, HIDDEN)


def make_raw_params(key):
    """Deterministic synthetic params with the exact nn.LSTM shapes (gate order [i,f,g,o])."""
    H = HIDDEN
    bound = 1.0 / jnp.sqrt(jnp.float32(H))
    ks = jax.random.split(key, 6)
    w_ih0 = jax.random.uniform(ks[0], (4 * H, INPUT_DIM), jnp.float32, -bound, bound)
    b_ih0 = jax.random.uniform(ks[1], (4 * H,), jnp.float32, -bound, bound)
    b_hh0 = jax.random.uniform(ks[2], (4 * H,), jnp.float32, -bound, bound)
    w_ih1 = jax.random.uniform(ks[3], (4 * H, H), jnp.float32, -bound, bound)
    b_ih1 = jax.random.uniform(ks[4], (4 * H,), jnp.float32, -bound, bound)
    b_hh1 = jax.random.uniform(ks[5], (4 * H,), jnp.float32, -bound, bound)
    # W_hh_l0 / W_hh_l1 exist in the module but multiply zero state for a
    # length-1 sequence with hidden0=None, so they never affect the output.
    return w_ih0, b_ih0, b_hh0, w_ih1, b_ih1, b_hh1


def prepare_kernel_params(raw):
    """Reorder gates to [i | o | g], drop the f-gate, transpose, cast weights to bf16."""
    H = HIDDEN
    w_ih0, b_ih0, b_hh0, w_ih1, b_ih1, b_hh1 = raw

    def iog(w):  # PyTorch rows are [i | f | g | o]; keep [i | o | g]
        return jnp.concatenate([w[0:H], w[3 * H:4 * H], w[2 * H:3 * H]], axis=0)

    w0_t = jnp.transpose(iog(w_ih0)).astype(jnp.bfloat16)                 # (1080, 192)
    b0 = iog(b_ih0 + b_hh0).reshape(1, GATE_DIM).astype(jnp.float32)      # (1, 192)
    w1_t = jnp.transpose(iog(w_ih1)).astype(jnp.bfloat16)                 # (64, 192)
    b1 = iog(b_ih1 + b_hh1).reshape(1, GATE_DIM).astype(jnp.float32)      # (1, 192)
    return w0_t, b0, w1_t, b1


def lstm_reference(x, raw):
    """Pure-JAX f32 reference of the PyTorch forward (seq_len==1, zero init state)."""
    H = HIDDEN
    w_ih0, b_ih0, b_hh0, w_ih1, b_ih1, b_hh1 = raw
    x2 = x.reshape(x.shape[0], -1)

    def cell(xt, w_ih, b_ih, b_hh):
        gates = xt @ w_ih.T + b_ih + b_hh         # (B, 4H), PyTorch order [i, f, g, o]
        i = jax.nn.sigmoid(gates[:, 0:H])
        g = jnp.tanh(gates[:, 2 * H:3 * H])
        o = jax.nn.sigmoid(gates[:, 3 * H:4 * H])
        c = i * g                                  # f * c0 == 0
        h = o * jnp.tanh(c)
        return h, c

    h1, _ = cell(x2, w_ih0, b_ih0, b_hh0)
    h2, c2 = cell(h1, w_ih1, b_ih1, b_hh1)
    return h2.reshape(-1, 1, H), c2.reshape(-1, 1, H)


if __name__ == "__main__":
    key = jax.random.PRNGKey(0)
    k_param, k_x = jax.random.split(key)
    raw = make_raw_params(k_param)
    kparams = prepare_kernel_params(raw)

    B = 2
    x = jax.random.normal(k_x, (B, INPUT_DIM), dtype=jnp.float32)

    h, c = jax.jit(lstm_forward)(x, *kparams)
    jax.block_until_ready((h, c))

    assert h.shape == (B, 1, HIDDEN) and c.shape == (B, 1, HIDDEN)
    assert jnp.all(jnp.isfinite(h)) and jnp.all(jnp.isfinite(c))

    h_ref, c_ref = lstm_reference(x, raw)
    err = max(float(jnp.max(jnp.abs(h - h_ref))), float(jnp.max(jnp.abs(c - c_ref))))
    assert err < 5e-2, f"max abs error vs f32 reference: {err}"

    print("KERNEL_OK")
</pallas_src>

<mosaic_0001>
module attributes {stable_mosaic.version = 11 : i64} {
  func.func @lstm_kernel(%arg0: i32, %arg1: memref<8x1080xf32, #tpu.memory_space<vmem>>, %arg2: memref<1080x192xbf16, #tpu.memory_space<vmem>>, %arg3: memref<1x192xf32, #tpu.memory_space<vmem>>, %arg4: memref<64x192xbf16, #tpu.memory_space<vmem>>, %arg5: memref<1x192xf32, #tpu.memory_space<vmem>>, %arg6: memref<8x64xf32, #tpu.memory_space<vmem>>, %arg7: memref<8x64xf32, #tpu.memory_space<vmem>>) attributes {dimension_semantics = [#tpu.dimension_semantics<parallel>], iteration_bounds = array<i64: 1>, scalar_prefetch = 0 : i64, scratch_operands = 0 : i64, tpu.core_type = #tpu.core_type<tc>, window_params = [{transform_indices = @transform_0, window_bounds = array<i64: 8, 1080>}, {pipeline_mode = #tpu.pipeline_mode<synchronous>, transform_indices = @transform_1, window_bounds = array<i64: 1080, 192>}, {pipeline_mode = #tpu.pipeline_mode<synchronous>, transform_indices = @transform_2, window_bounds = array<i64: 1, 192>}, {pipeline_mode = #tpu.pipeline_mode<synchronous>, transform_indices = @transform_3, window_bounds = array<i64: 64, 192>}, {pipeline_mode = #tpu.pipeline_mode<synchronous>, transform_indices = @transform_4, window_bounds = array<i64: 1, 192>}, {transform_indices = @transform_5, window_bounds = array<i64: 8, 64>}, {transform_indices = @transform_6, window_bounds = array<i64: 8, 64>}]} {
    %c0 = arith.constant 0 : index
    %c0_0 = arith.constant 0 : index
    %0 = vector.load %arg1[%c0, %c0_0] : memref<8x1080xf32, #tpu.memory_space<vmem>>, vector<8x1080xf32>
    %1 = arith.truncf %0 : vector<8x1080xf32> to vector<8x1080xbf16>
    %c0_1 = arith.constant 0 : index
    %c0_2 = arith.constant 0 : index
    %2 = vector.load %arg2[%c0_1, %c0_2] : memref<1080x192xbf16, #tpu.memory_space<vmem>>, vector<1080x192xbf16>
    %cst = arith.constant dense<0.000000e+00> : vector<8x192xf32>
    %3 = tpu.matmul %1, %2, %cst {dimension_numbers = #tpu.dot_dimension_numbers<[1], [0], [0], [1], [0, 0, 1, 1], [], []>} : vector<8x1080xbf16>, vector<1080x192xbf16>, vector<8x192xf32> -> vector<8x192xf32>
    %c0_3 = arith.constant 0 : index
    %c0_4 = arith.constant 0 : index
    %4 = vector.load %arg3[%c0_3, %c0_4] : memref<1x192xf32, #tpu.memory_space<vmem>>, vector<1x192xf32>
    %5 = vector.broadcast %4 : vector<1x192xf32> to vector<8x192xf32>
    %6 = arith.addf %3, %5 : vector<8x192xf32>
    %7 = vector.extract_strided_slice %6 {offsets = [0, 0], sizes = [8, 128], strides = [1, 1]} : vector<8x192xf32> to vector<8x128xf32>
    %8 = arith.negf %7 : vector<8x128xf32>
    %9 = math.exp %8 : vector<8x128xf32>
    %cst_5 = arith.constant 1.000000e+00 : f32
    %10 = vector.broadcast %cst_5 : f32 to vector<8x128xf32>
    %11 = arith.addf %10, %9 : vector<8x128xf32>
    %12 = arith.divf %10, %11 : vector<8x128xf32>
    %13 = vector.extract_strided_slice %12 {offsets = [0, 0], sizes = [8, 64], strides = [1, 1]} : vector<8x128xf32> to vector<8x64xf32>
    %14 = vector.extract_strided_slice %12 {offsets = [0, 64], sizes = [8, 64], strides = [1, 1]} : vector<8x128xf32> to vector<8x64xf32>
    %15 = vector.extract_strided_slice %6 {offsets = [0, 128], sizes = [8, 64], strides = [1, 1]} : vector<8x192xf32> to vector<8x64xf32>
    %16 = math.tanh %15 : vector<8x64xf32>
    %17 = arith.mulf %13, %16 : vector<8x64xf32>
    %18 = math.tanh %17 : vector<8x64xf32>
    %19 = arith.mulf %14, %18 : vector<8x64xf32>
    %20 = arith.truncf %19 : vector<8x64xf32> to vector<8x64xbf16>
    %c0_6 = arith.constant 0 : index
    %c0_7 = arith.constant 0 : index
    %21 = vector.load %arg4[%c0_6, %c0_7] : memref<64x192xbf16, #tpu.memory_space<vmem>>, vector<64x192xbf16>
    %cst_8 = arith.constant dense<0.000000e+00> : vector<8x192xf32>
    %22 = tpu.matmul %20, %21, %cst_8 {dimension_numbers = #tpu.dot_dimension_numbers<[1], [0], [0], [1], [0, 0, 1, 1], [], []>} : vector<8x64xbf16>, vector<64x192xbf16>, vector<8x192xf32> -> vector<8x192xf32>
    %c0_9 = arith.constant 0 : index
    %c0_10 = arith.constant 0 : index
    %23 = vector.load %arg5[%c0_9, %c0_10] : memref<1x192xf32, #tpu.memory_space<vmem>>, vector<1x192xf32>
    %24 = vector.broadcast %23 : vector<1x192xf32> to vector<8x192xf32>
    %25 = arith.addf %22, %24 : vector<8x192xf32>
    %26 = vector.extract_strided_slice %25 {offsets = [0, 0], sizes = [8, 128], strides = [1, 1]} : vector<8x192xf32> to vector<8x128xf32>
    %27 = arith.negf %26 : vector<8x128xf32>
    %28 = math.exp %27 : vector<8x128xf32>
    %cst_11 = arith.constant 1.000000e+00 : f32
    %29 = vector.broadcast %cst_11 : f32 to vector<8x128xf32>
    %30 = arith.addf %29, %28 : vector<8x128xf32>
    %31 = arith.divf %29, %30 : vector<8x128xf32>
    %32 = vector.extract_strided_slice %31 {offsets = [0, 0], sizes = [8, 64], strides = [1, 1]} : vector<8x128xf32> to vector<8x64xf32>
    %33 = vector.extract_strided_slice %31 {offsets = [0, 64], sizes = [8, 64], strides = [1, 1]} : vector<8x128xf32> to vector<8x64xf32>
    %34 = vector.extract_strided_slice %25 {offsets = [0, 128], sizes = [8, 64], strides = [1, 1]} : vector<8x192xf32> to vector<8x64xf32>
    %35 = math.tanh %34 : vector<8x64xf32>
    %36 = arith.mulf %32, %35 : vector<8x64xf32>
    %37 = math.tanh %36 : vector<8x64xf32>
    %38 = arith.mulf %33, %37 : vector<8x64xf32>
    %c0_12 = arith.constant 0 : index
    %c0_13 = arith.constant 0 : index
    %39 = vector.load %arg6[%c0_12, %c0_13] : memref<8x64xf32, #tpu.memory_space<vmem>>, vector<8x64xf32>
    tpu.vector_store %arg6[%c0_12, %c0_13], %38 {strides = array<i32>} : memref<8x64xf32, #tpu.memory_space<vmem>>, vector<8x64xf32>,
    %c0_14 = arith.constant 0 : index
    %c0_15 = arith.constant 0 : index
    %40 = vector.load %arg7[%c0_14, %c0_15] : memref<8x64xf32, #tpu.memory_space<vmem>>, vector<8x64xf32>
    tpu.vector_store %arg7[%c0_14, %c0_15], %36 {strides = array<i32>} : memref<8x64xf32, #tpu.memory_space<vmem>>, vector<8x64xf32>,
    return
  }
  func.func @transform_0(%arg0: i32) -> (i32, i32) {
    %c0_i32 = arith.constant 0 : i32
    %c0_i32_0 = arith.constant 0 : i32
    return %arg0, %c0_i32 : i32, i32
  }
  func.func @transform_1(%arg0: i32) -> (i32, i32) {
    %c0_i32 = arith.constant 0 : i32
    %c0_i32_0 = arith.constant 0 : i32
    %c0_i32_1 = arith.constant 0 : i32
    return %c0_i32, %c0_i32_0 : i32, i32
  }
  func.func @transform_2(%arg0: i32) -> (i32, i32) {
    %c0_i32 = arith.constant 0 : i32
    %c0_i32_0 = arith.constant 0 : i32
    %c0_i32_1 = arith.constant 0 : i32
    return %c0_i32, %c0_i32_0 : i32, i32
  }
  func.func @transform_3(%arg0: i32) -> (i32, i32) {
    %c0_i32 = arith.constant 0 : i32
    %c0_i32_0 = arith.constant 0 : i32
    %c0_i32_1 = arith.constant 0 : i32
    return %c0_i32, %c0_i32_0 : i32, i32
  }
  func.func @transform_4(%arg0: i32) -> (i32, i32) {
    %c0_i32 = arith.constant 0 : i32
    %c0_i32_0 = arith.constant 0 : i32
    %c0_i32_1 = arith.constant 0 : i32
    return %c0_i32, %c0_i32_0 : i32, i32
  }
  func.func @transform_5(%arg0: i32) -> (i32, i32) {
    %c0_i32 = arith.constant 0 : i32
    %c0_i32_0 = arith.constant 0 : i32
    return %arg0, %c0_i32 : i32, i32
  }
  func.func @transform_6(%arg0: i32) -> (i32, i32) {
    %c0_i32 = arith.constant 0 : i32
    %c0_i32_0 = arith.constant 0 : i32
    return %arg0, %c0_i32 : i32, i32
  }
}

</mosaic_0001>

<bundles_post_ra>
// kernel: lstm_forward.1
= control target key start
LH: loop header
LB: loop body
LE: loop exit
PB: predicated region body
PF: predicated region fallthrough
CT: control target
= control target key end

     0   :  { %vm867_vm0 = vcmask 1043456   ;;  %vm863_vm1 = vcmask 457728   ;;  %s1629_s30 = smov 64   ;;  %vm1157_vm2 = vcmask 523264   ;;  %s2144_s1 = inlined_call_operand.vmem [shape: bf16[1080,192], index: 1, kind: input, shape index: {}]   ;;  %s2145_s0 = inlined_call_operand.vmem [shape: f32[8,1080], index: 0, kind: input, shape index: {}]   ;;  %s2146_s2 = inlined_call_operand.vmem [shape: f32[1,192], index: 2, kind: input, shape index: {}]   ;;  %s2147_s3 = inlined_call_operand.vmem [shape: bf16[64,192], index: 3, kind: input, shape index: {}]   ;;  %s2148_s4 = inlined_call_operand.vmem [shape: f32[1,192], index: 4, kind: input, shape index: {}]   ;;  %s2149_s6 = inlined_call_operand.vmem [shape: f32[8,64], index: 6, kind: output, shape index: {1}]   ;;  %s2150_s5 = inlined_call_operand.vmem [shape: f32[8,64], index: 5, kind: output, shape index: {0}]  }
   0x1   :  { %v1397_v0 = vld [vmem:[%s2144_s1 + $0x4] ss:$8 sps:$4 sm:$0xff]   ;;  %v1401_v2 = vld [vmem:[%s2144_s1] ss:$8 sps:$4 sm:$0xff]   ;;  %v1403_v4 = vld [vmem:[%s2144_s1 + $0x14] ss:$8 sps:$4 sm:$0xff]  }
   0x2   :  { %v1399_v1 = vld [vmem:[%s2144_s1 + $0x204] ss:$8 sps:$4 sm:$0xff]   ;;  %874 = vmatprep.subr.bf16.mxu1 %v1397_v0  ;;  %v1402_v3 = vld [vmem:[%s2144_s1 + $0x200] ss:$8 sps:$4 sm:$0xff]   ;;  %v1405_v5 = vld [vmem:[%s2144_s1 + $0x214] ss:$8 sps:$4 sm:$0xff]  }
   0x3   :  { %956 = vmatprep.subr.bf16.mxu0 %v1399_v1  ;;  %875 = vmatpush1.bf16.msra.mxu1 %v1401_v2  ;;  %v1407_v6 = vld [vmem:[%s2144_s1 + $0x10] ss:$8 sps:$4 sm:$0xff]   ;;  %v1409_v8 = vld [vmem:[%s2144_s1 + $0x24] ss:$8 sps:$4 sm:$0xff]   ;;  %v1413_v10 = vld [vmem:[%s2144_s1 + $0x20] ss:$8 sps:$4 sm:$0xff]  }
   0x4   :  { %957 = vmatpush1.bf16.msra.mxu0 %v1402_v3  ;;  %876 = vmatprep.subr.bf16.mxu1 %v1403_v4  ;;  %v1408_v7 = vld [vmem:[%s2144_s1 + $0x210] ss:$8 sps:$4 sm:$0xff]   ;;  %v1411_v9 = vld [vmem:[%s2144_s1 + $0x224] ss:$8 sps:$4 sm:$0xff]   ;;  %v1414_v11 = vld [vmem:[%s2144_s1 + $0x220] ss:$8 sps:$4 sm:$0xff]  }
   0x5   :  { %958 = vmatprep.subr.bf16.mxu0 %v1405_v5  ;;  %v1415_v12 = vld [vmem:[%s2144_s1 + $0x34] ss:$8 sps:$4 sm:$0xff]   ;;  %v1419_v14 = vld [vmem:[%s2144_s1 + $0x30] ss:$8 sps:$4 sm:$0xff]   ;;  %v1421_v16 = vld [vmem:[%s2144_s1 + $0x44] ss:$8 sps:$4 sm:$0xff]  }
   0x6   :  { %v1417_v13 = vld [vmem:[%s2144_s1 + $0x234] ss:$8 sps:$4 sm:$0xff]   ;;  %v1420_v15 = vld [vmem:[%s2144_s1 + $0x230] ss:$8 sps:$4 sm:$0xff]   ;;  %v1423_v17 = vld [vmem:[%s2144_s1 + $0x244] ss:$8 sps:$4 sm:$0xff]  }
   0x7   :  { %877 = vmatpush1.bf16.msra.mxu1 %v1407_v6  ;;  %v1425_v18 = vld [vmem:[%s2144_s1 + $0x40] ss:$8 sps:$4 sm:$0xff]   ;;  %v1427_v20 = vld [vmem:[%s2144_s1 + $0x54] ss:$8 sps:$4 sm:$0xff]   ;;  %v1431_v22 = vld [vmem:[%s2144_s1 + $0x50] ss:$8 sps:$4 sm:$0xff]  }
   0x8   :  { %959 = vmatpush1.bf16.msra.mxu0 %v1408_v7  ;;  %878 = vmatprep.subr.bf16.mxu1 %v1409_v8  ;;  %v1426_v19 = vld [vmem:[%s2144_s1 + $0x240] ss:$8 sps:$4 sm:$0xff]   ;;  %v1429_v21 = vld [vmem:[%s2144_s1 + $0x254] ss:$8 sps:$4 sm:$0xff]   ;;  %v1432_v23 = vld [vmem:[%s2144_s1 + $0x250] ss:$8 sps:$4 sm:$0xff]  }
   0x9   :  { %960 = vmatprep.subr.bf16.mxu0 %v1411_v9  ;;  %v1433_v24 = vld [vmem:[%s2144_s1 + $0x64] ss:$8 sps:$4 sm:$0xff]   ;;  %v1437_v26 = vld [vmem:[%s2144_s1 + $0x60] ss:$8 sps:$4 sm:$0xff]   ;;  %v1439_v28 = vld [vmem:[%s2144_s1 + $0x74] ss:$8 sps:$4 sm:$0xff]  }
   0xa   :  { %v1435_v25 = vld [vmem:[%s2144_s1 + $0x264] ss:$8 sps:$4 sm:$0xff]   ;;  %v1438_v27 = vld [vmem:[%s2144_s1 + $0x260] ss:$8 sps:$4 sm:$0xff]   ;;  %v1441_v29 = vld [vmem:[%s2144_s1 + $0x274] ss:$8 sps:$4 sm:$0xff]  }
   0xb   :  { %879 = vmatpush1.bf16.msra.mxu1 %v1413_v10  ;;  %v1443_v30 = vld [vmem:[%s2144_s1 + $0x70] ss:$8 sps:$4 sm:$0xff]   ;;  %v1445_v32 = vld [vmem:[%s2144_s1 + $0x84] ss:$8 sps:$4 sm:$0xff]   ;;  %v1449_v34 = vld [vmem:[%s2144_s1 + $0x80] ss:$8 sps:$4 sm:$0xff]  }
   0xc   :  { %961 = vmatpush1.bf16.msra.mxu0 %v1414_v11  ;;  %880 = vmatprep.subr.bf16.mxu1 %v1415_v12  ;;  %v1444_v31 = vld [vmem:[%s2144_s1 + $0x270] ss:$8 sps:$4 sm:$0xff]   ;;  %v1447_v33 = vld [vmem:[%s2144_s1 + $0x284] ss:$8 sps:$4 sm:$0xff]   ;;  %v1450_v35 = vld [vmem:[%s2144_s1 + $0x280] ss:$8 sps:$4 sm:$0xff]  }
   0xd   :  { %962 = vmatprep.subr.bf16.mxu0 %v1417_v13  ;;  %v1451_v36 = vld [vmem:[%s2144_s1 + $0x94] ss:$8 sps:$4 sm:$0xff]   ;;  %v1455_v38 = vld [vmem:[%s2144_s1 + $0x90] ss:$8 sps:$4 sm:$0xff]   ;;  %v1457_v40 = vld [vmem:[%s2144_s1 + $0xa4] ss:$8 sps:$4 sm:$0xff]  }
   0xe   :  { %v1453_v37 = vld [vmem:[%s2144_s1 + $0x294] ss:$8 sps:$4 sm:$0xff]   ;;  %v1456_v39 = vld [vmem:[%s2144_s1 + $0x290] ss:$8 sps:$4 sm:$0xff]   ;;  %v1459_v41 = vld [vmem:[%s2144_s1 + $0x2a4] ss:$8 sps:$4 sm:$0xff]  }
   0xf   :  { %881 = vmatpush1.bf16.msra.mxu1 %v1419_v14  ;;  %v1461_v42 = vld [vmem:[%s2144_s1 + $0xa0] ss:$8 sps:$4 sm:$0xff]   ;;  %v1463_v44 = vld [vmem:[%s2144_s1 + $0xb4] ss:$8 sps:$4 sm:$0xff]   ;;  %v1467_v47 = vld [vmem:[%s2144_s1 + $0xb0] ss:$8 sps:$4 sm:$0xff]  }
  0x10   :  { %963 = vmatpush1.bf16.msra.mxu0 %v1420_v15  ;;  %882 = vmatprep.subr.bf16.mxu1 %v1421_v16  ;;  %v1462_v43 = vld [vmem:[%s2144_s1 + $0x2a0] ss:$8 sps:$4 sm:$0xff]   ;;  %v1465_v45 = vld [vmem:[%s2144_s1 + $0x2b4] ss:$8 sps:$4 sm:$0xff]   ;;  %v1468_v49 = vld [vmem:[%s2144_s1 + $0x2b0] ss:$8 sps:$4 sm:$0xff]  }
  0x11   :  { %964 = vmatprep.subr.bf16.mxu0 %v1423_v17  ;;  %v24_v46 = vld [vmem:[%s2145_s0 + $0x8] sm:$0xff]  ;;  %v1475_v56 = vld [vmem:[%s2144_s1 + $0xd4] ss:$8 sps:$4 sm:$0xff]   ;;  %v1479_v58 = vld [vmem:[%s2144_s1 + $0xd0] ss:$8 sps:$4 sm:$0xff]  }
  0x12   :  { %v33_v48 = vpack.c.bf16 %v24_v46, %v24_v46  ;;  %v28_v50 = vld [vmem:[%s2145_s0 + $0x28] sm:$0xff]  ;;  %v1477_v57 = vld [vmem:[%s2144_s1 + $0x2d4] ss:$8 sps:$4 sm:$0xff]   ;;  %v1480_v59 = vld [vmem:[%s2144_s1 + $0x2d0] ss:$8 sps:$4 sm:$0xff]  }
  0x13   :  { %883 = vmatpush1.bf16.msra.mxu1 %v1425_v18  ;;  %v1469_v51 = vld [vmem:[%s2144_s1 + $0xc4] ss:$8 sps:$4 sm:$0xff]   ;;  %v37_v53 = vpack.c.bf16 %v28_v50, %v28_v50  ;;  %v1473_v54 = vld [vmem:[%s2144_s1 + $0xc0] ss:$8 sps:$4 sm:$0xff]   ;;  %v1487_v0 = vld [vmem:[%s2144_s1 + $0xf4] ss:$8 sps:$4 sm:$0xff]  }
  0x14   :  { %965 = vmatpush1.bf16.msra.mxu0 %v1426_v19  ;;  %884 = vmatprep.subr.bf16.mxu1 %v1427_v20  ;;  %v1471_v52 = vld [vmem:[%s2144_s1 + $0x2c4] ss:$8 sps:$4 sm:$0xff]   ;;  %v1474_v55 = vld [vmem:[%s2144_s1 + $0x2c0] ss:$8 sps:$4 sm:$0xff]   ;;  %v1489_v1 = vld [vmem:[%s2144_s1 + $0x2f4] ss:$8 sps:$4 sm:$0xff]  }
  0x15   :  { %966 = vmatprep.subr.bf16.mxu0 %v1429_v21  ;;  %906 = vmatprep.mubr.bf16.mxu1 %v33_v48  ;;  %v1481_v60 = vld [vmem:[%s2144_s1 + $0xe4] ss:$8 sps:$4 sm:$0xff]   ;;  %v1485_v62 = vld [vmem:[%s2144_s1 + $0xe0] ss:$8 sps:$4 sm:$0xff]   ;;  %v1491_v2 = vld [vmem:[%s2144_s1 + $0xf0] ss:$8 sps:$4 sm:$0xff]  }
  0x16   :  { %988 = vmatprep.mubr.bf16.mxu0 %v37_v53  ;;  %v1483_v61 = vld [vmem:[%s2144_s1 + $0x2e4] ss:$8 sps:$4 sm:$0xff]   ;;  %v1486_v63 = vld [vmem:[%s2144_s1 + $0x2e0] ss:$8 sps:$4 sm:$0xff]   ;;  %v1492_v3 = vld [vmem:[%s2144_s1 + $0x2f0] ss:$8 sps:$4 sm:$0xff]  }
  0x17   :  { %885 = vmatpush1.bf16.msra.mxu1 %v1431_v22  ;;  %v1495_v4 = vld [vmem:[%s2144_s1 + $0x104] ss:$8 sps:$4 sm:$0xff]   ;;  %v1493_v8 = vld [vmem:[%s2144_s1 + $0x100] ss:$8 sps:$4 sm:$0xff]   ;;  %v1501_v12 = vld [vmem:[%s2144_s1 + $0x114] ss:$8 sps:$4 sm:$0xff]  }
  0x18   :  { %967 = vmatpush1.bf16.msra.mxu0 %v1432_v23  ;;  %886 = vmatprep.subr.bf16.mxu1 %v1433_v24  ;;  %v23_v5 = vld [vmem:[%s2145_s0] sm:$0xff]  ;;  %v1504_v13 = vld [vmem:[%s2144_s1 + $0x314] ss:$8 sps:$4 sm:$0xff]   ;;  %v1499_v14 = vld [vmem:[%s2144_s1 + $0x110] ss:$8 sps:$4 sm:$0xff]  }
  0x19   :  { %968 = vmatprep.subr.bf16.mxu0 %v1435_v25  ;;  %v27_v6 = vld [vmem:[%s2145_s0 + $0x20] sm:$0xff]  ;;  %v32_v10 = vpack.c.bf16 %v23_v5, %v23_v5  ;;  %v1502_v15 = vld [vmem:[%s2144_s1 + $0x310] ss:$8 sps:$4 sm:$0xff]   ;;  %v1513_v20 = vld [vmem:[%s2144_s1 + $0x134] ss:$8 sps:$4 sm:$0xff]  }
  0x1a   :  { %v1498_v7 = vld [vmem:[%s2144_s1 + $0x304] ss:$8 sps:$4 sm:$0xff]   ;;  %v1496_v9 = vld [vmem:[%s2144_s1 + $0x300] ss:$8 sps:$4 sm:$0xff]   ;;  %v36_v11 = vpack.c.bf16 %v27_v6, %v27_v6  ;;  %v1516_v21 = vld [vmem:[%s2144_s1 + $0x334] ss:$8 sps:$4 sm:$0xff]  }
  0x1b   :  { %887 = vmatpush1.bf16.msra.mxu1 %v1437_v26  ;;  %v1507_v16 = vld [vmem:[%s2144_s1 + $0x124] ss:$8 sps:$4 sm:$0xff]   ;;  %v1505_v18 = vld [vmem:[%s2144_s1 + $0x120] ss:$8 sps:$4 sm:$0xff]   ;;  %v1511_v22 = vld [vmem:[%s2144_s1 + $0x130] ss:$8 sps:$4 sm:$0xff]  }
  0x1c   :  { %969 = vmatpush1.bf16.msra.mxu0 %v1438_v27  ;;  %888 = vmatprep.subr.bf16.mxu1 %v1439_v28  ;;  %v1510_v17 = vld [vmem:[%s2144_s1 + $0x324] ss:$8 sps:$4 sm:$0xff]   ;;  %v1508_v19 = vld [vmem:[%s2144_s1 + $0x320] ss:$8 sps:$4 sm:$0xff]   ;;  %v1514_v23 = vld [vmem:[%s2144_s1 + $0x330] ss:$8 sps:$4 sm:$0xff]  }
  0x1d   :  { %970 = vmatprep.subr.bf16.mxu0 %v1441_v29  ;;  %v1519_v24 = vld [vmem:[%s2144_s1 + $0x144] ss:$8 sps:$4 sm:$0xff]   ;;  %v1517_v26 = vld [vmem:[%s2144_s1 + $0x140] ss:$8 sps:$4 sm:$0xff]   ;;  %v1525_v28 = vld [vmem:[%s2144_s1 + $0x154] ss:$8 sps:$4 sm:$0xff]  }
  0x1e   :  { %v1522_v25 = vld [vmem:[%s2144_s1 + $0x344] ss:$8 sps:$4 sm:$0xff]   ;;  %v1520_v27 = vld [vmem:[%s2144_s1 + $0x340] ss:$8 sps:$4 sm:$0xff]   ;;  %v1528_v29 = vld [vmem:[%s2144_s1 + $0x354] ss:$8 sps:$4 sm:$0xff]  }
  0x1f   :  { %889 = vmatpush1.bf16.msra.mxu1 %v1443_v30  ;;  %v1523_v30 = vld [vmem:[%s2144_s1 + $0x150] ss:$8 sps:$4 sm:$0xff]   ;;  %v1541_v46 = vld [vmem:[%s2144_s1 + $0x180] ss:$8 sps:$4 sm:$0xff]   ;;  %v1549_v48 = vld [vmem:[%s2144_s1 + $0x194] ss:$8 sps:$4 sm:$0xff]  }
  0x20   :  { %971 = vmatpush1.bf16.msra.mxu0 %v1444_v31  ;;  %890 = vmatprep.subr.bf16.mxu1 %v1445_v32  ;;  %v1526_v31 = vld [vmem:[%s2144_s1 + $0x350] ss:$8 sps:$4 sm:$0xff]   ;;  %v1531_v32 = vld [vmem:[%s2144_s1 + $0x164] ss:$8 sps:$4 sm:$0xff]   ;;  %v1577_v6 = vld [vmem:[%s2144_s1 + $0x1e0] ss:$8 sps:$4 sm:$0xff]  }
  0x21   :  { %972 = vmatprep.subr.bf16.mxu0 %v1447_v33  ;;  %v1534_v33 = vld [vmem:[%s2144_s1 + $0x364] ss:$8 sps:$4 sm:$0xff]   ;;  %v1547_v50 = vld [vmem:[%s2144_s1 + $0x190] ss:$8 sps:$4 sm:$0xff]  }
  0x22   :  { %v1558_v53 = vld [vmem:[%s2144_s1 + $0x3a4] ss:$8 sps:$4 sm:$0xff]  }
  0x23   :  { %891 = vmatpush1.bf16.msra.mxu1 %v1449_v34  ;;  %v26_v34 = vld [vmem:[%s2145_s0 + $0x18] sm:$0xff]  ;;  %v1582_v5 = vld [vmem:[%s2144_s1 + $0x3e4] ss:$8 sps:$4 sm:$0xff]  }
  0x24   :  { %973 = vmatpush1.bf16.msra.mxu0 %v1450_v35  ;;  %892 = vmatprep.subr.bf16.mxu1 %v1451_v36  ;;  %v1529_v35 = vld [vmem:[%s2144_s1 + $0x160] ss:$8 sps:$4 sm:$0xff]   ;;  %v35_v36 = vpack.c.bf16 %v26_v34, %v26_v34 }
  0x25   :  { %974 = vmatprep.subr.bf16.mxu0 %v1453_v37  ;;  %v30_v37 = vld [vmem:[%s2145_s0 + $0x38] sm:$0xff] }
  0x27   :  { %893 = vmatpush1.bf16.msra.mxu1 %v1455_v38  ;;  %v1532_v38 = vld [vmem:[%s2144_s1 + $0x360] ss:$8 sps:$4 sm:$0xff]  }
  0x28   :  { %975 = vmatpush1.bf16.msra.mxu0 %v1456_v39  ;;  %894 = vmatprep.subr.bf16.mxu1 %v1457_v40  ;;  %v1537_v39 = vld [vmem:[%s2144_s1 + $0x174] ss:$8 sps:$4 sm:$0xff]   ;;  %v39_v40 = vpack.c.bf16 %v30_v37, %v30_v37 }
  0x29   :  { %976 = vmatprep.subr.bf16.mxu0 %v1459_v41  ;;  %v1540_v41 = vld [vmem:[%s2144_s1 + $0x374] ss:$8 sps:$4 sm:$0xff]  }
  0x2b   :  { %895 = vmatpush1.bf16.msra.mxu1 %v1461_v42  ;;  %v1535_v42 = vld [vmem:[%s2144_s1 + $0x170] ss:$8 sps:$4 sm:$0xff]  }
  0x2c   :  { %977 = vmatpush1.bf16.msra.mxu0 %v1462_v43  ;;  %896 = vmatprep.subr.bf16.mxu1 %v1463_v44  ;;  %v1538_v43 = vld [vmem:[%s2144_s1 + $0x370] ss:$8 sps:$4 sm:$0xff]   ;;  %v1543_v44 = vld [vmem:[%s2144_s1 + $0x184] ss:$8 sps:$4 sm:$0xff]  }
  0x2d   :  { %978 = vmatprep.subr.bf16.mxu0 %v1465_v45  ;;  %v1546_v45 = vld [vmem:[%s2144_s1 + $0x384] ss:$8 sps:$4 sm:$0xff]  }
  0x2f   :  { %897 = vmatpush1.bf16.msra.mxu1 %v1467_v47  ;;  %v1544_v47 = vld [vmem:[%s2144_s1 + $0x380] ss:$8 sps:$4 sm:$0xff]  }
  0x30   :  { %979 = vmatpush1.bf16.msra.mxu0 %v1468_v49  ;;  %898 = vmatprep.subr.bf16.mxu1 %v1469_v51  ;;  %v1552_v49 = vld [vmem:[%s2144_s1 + $0x394] ss:$8 sps:$4 sm:$0xff]   ;;  %v1550_v51 = vld [vmem:[%s2144_s1 + $0x390] ss:$8 sps:$4 sm:$0xff]  }
  0x31   :  { %980 = vmatprep.subr.bf16.mxu0 %v1471_v52  ;;  %v1555_v52 = vld [vmem:[%s2144_s1 + $0x1a4] ss:$8 sps:$4 sm:$0xff]  }
  0x33   :  { %899 = vmatpush1.bf16.msra.mxu1 %v1473_v54  ;;  %v1553_v54 = vld [vmem:[%s2144_s1 + $0x1a0] ss:$8 sps:$4 sm:$0xff]  }
  0x34   :  { %981 = vmatpush1.bf16.msra.mxu0 %v1474_v55  ;;  %900 = vmatprep.subr.bf16.mxu1 %v1475_v56  ;;  %v1556_v55 = vld [vmem:[%s2144_s1 + $0x3a0] ss:$8 sps:$4 sm:$0xff]   ;;  %v1561_v56 = vld [vmem:[%s2144_s1 + $0x1b4] ss:$8 sps:$4 sm:$0xff]  }
  0x35   :  { %982 = vmatprep.subr.bf16.mxu0 %v1477_v57  ;;  %v1564_v57 = vld [vmem:[%s2144_s1 + $0x3b4] ss:$8 sps:$4 sm:$0xff]  }
  0x37   :  { %901 = vmatpush1.bf16.msra.mxu1 %v1479_v58  ;;  %v1559_v58 = vld [vmem:[%s2144_s1 + $0x1b0] ss:$8 sps:$4 sm:$0xff]  }
  0x38   :  { %983 = vmatpush1.bf16.msra.mxu0 %v1480_v59  ;;  %902 = vmatprep.subr.bf16.mxu1 %v1481_v60  ;;  %v1562_v59 = vld [vmem:[%s2144_s1 + $0x3b0] ss:$8 sps:$4 sm:$0xff]   ;;  %v1567_v60 = vld [vmem:[%s2144_s1 + $0x1c4] ss:$8 sps:$4 sm:$0xff]  }
  0x39   :  { %984 = vmatprep.subr.bf16.mxu0 %v1483_v61  ;;  %v1570_v61 = vld [vmem:[%s2144_s1 + $0x3c4] ss:$8 sps:$4 sm:$0xff]  }
  0x3b   :  { %903 = vmatpush1.bf16.msra.mxu1 %v1485_v62  ;;  %v1565_v62 = vld [vmem:[%s2144_s1 + $0x1c0] ss:$8 sps:$4 sm:$0xff]  }
  0x3c   :  { %985 = vmatpush1.bf16.msra.mxu0 %v1486_v63  ;;  %904 = vmatprep.subr.bf16.mxu1 %v1487_v0  ;;  %v1568_v63 = vld [vmem:[%s2144_s1 + $0x3c0] ss:$8 sps:$4 sm:$0xff]   ;;  %v1573_v0 = vld [vmem:[%s2144_s1 + $0x1d4] ss:$8 sps:$4 sm:$0xff]  }
  0x3d   :  { %986 = vmatprep.subr.bf16.mxu0 %v1489_v1  ;;  %v1576_v1 = vld [vmem:[%s2144_s1 + $0x3d4] ss:$8 sps:$4 sm:$0xff]  }
  0x3f   :  { %905 = vmatpush1.bf16.msra.mxu1 %v1491_v2  ;;  %v1571_v2 = vld [vmem:[%s2144_s1 + $0x1d0] ss:$8 sps:$4 sm:$0xff]  }
  0x40   :  { %987 = vmatpush1.bf16.msra.mxu0 %v1492_v3  ;;  %915 = vmatprep.subr.bf16.mxu1 %v1495_v4  ;;  %v1574_v3 = vld [vmem:[%s2144_s1 + $0x3d0] ss:$8 sps:$4 sm:$0xff]   ;;  %v1579_v4 = vld [vmem:[%s2144_s1 + $0x1e4] ss:$8 sps:$4 sm:$0xff]  }
  0x41   :  { %997 = vmatprep.subr.bf16.mxu0 %v1498_v7  ;;  %v1580_v7 = vld [vmem:[%s2144_s1 + $0x3e0] ss:$8 sps:$4 sm:$0xff]  }
  0x42   :  { %907 = vmatmul.mubr.bf16.vlgmr.msra.gmra.mrb[0].mxu1 %v32_v10  ;;  %v1583_v10 = vld [vmem:[%s2144_s1 + $0x1f0] ss:$8 sps:$4 sm:$0xff]  }
  0x43   :  { %989 = vmatmul.mubr.bf16.vlgmr.msra.gmra.mrb[0].mxu0 %v36_v11  ;;  %916 = vmatpush1.bf16.msra.mxu1 %v1493_v8  ;;  %v1585_v8 = vld [vmem:[%s2144_s1 + $0x1f4] ss:$8 sps:$4 sm:$0xff]   ;;  %v1586_v11 = vld [vmem:[%s2144_s1 + $0x3f0] ss:$8 sps:$4 sm:$0xff]  }
  0x44   :  { %998 = vmatpush1.bf16.msra.mxu0 %v1496_v9  ;;  %917 = vmatprep.subr.bf16.mxu1 %v1501_v12  ;;  %v1588_v9 = vld [vmem:[%s2144_s1 + $0x3f4] ss:$8 sps:$4 sm:$0xff]  }
  0x45   :  { %999 = vmatprep.subr.bf16.mxu0 %v1504_v13  ;;  %947 = vmatprep.mubr.bf16.mxu1 %v35_v36  ;;  %v25_v12 = vld [vmem:[%s2145_s0 + $0x10] sm:$0xff]  ;;  %v176_v36 = vld [vmem:[%s2146_s2] sm:$0x3] }
  0x46   :  { %1029 = vmatprep.mubr.bf16.mxu0 %v39_v40  ;;  %v29_v13 = vld [vmem:[%s2145_s0 + $0x30] sm:$0xff] }
  0x47   :  { %918 = vmatpush1.bf16.msra.mxu1 %v1499_v14  ;;  %v1591_v14 = vld [vmem:[%s2144_s1 + $0x404] ss:$8 sps:$4 sm:$0xff]  }
  0x48   :  { %1000 = vmatpush1.bf16.msra.mxu0 %v1502_v15  ;;  %919 = vmatprep.subr.bf16.mxu1 %v1507_v16  ;;  %v34_v15 = vpack.c.bf16 %v25_v12, %v25_v12  ;;  %v38_v16 = vpack.c.bf16 %v29_v13, %v29_v13 }
  0x49   :  { %1001 = vmatprep.subr.bf16.mxu0 %v1510_v17  ;;  %v1589_v17 = vld [vmem:[%s2144_s1 + $0x400] ss:$8 sps:$4 sm:$0xff]  }
  0x4b   :  { %920 = vmatpush1.bf16.msra.mxu1 %v1505_v18  ;;  %v1594_v18 = vld [vmem:[%s2144_s1 + $0x414] ss:$8 sps:$4 sm:$0xff]  }
  0x4c   :  { %1002 = vmatpush1.bf16.msra.mxu0 %v1508_v19  ;;  %921 = vmatprep.subr.bf16.mxu1 %v1513_v20  ;;  %v1592_v19 = vld [vmem:[%s2144_s1 + $0x410] ss:$8 sps:$4 sm:$0xff]   ;;  %v1628_v20 = vmov 0  }
  0x4d   :  { %1003 = vmatprep.subr.bf16.mxu0 %v1516_v21  ;;  %v1597_v21 = vld [vmem:[%s2144_s1 + $0x424] ss:$8 sps:$4 sm:$0xff]  }
  0x4f   :  { %922 = vmatpush1.bf16.msra.mxu1 %v1511_v22  ;;  %v175_v22 = vld [vmem:[%s2144_s1 + $0x430] sm:$0xff] }
  0x50   :  { %1004 = vmatpush1.bf16.msra.mxu0 %v1514_v23  ;;  %923 = vmatprep.subr.bf16.mxu1 %v1519_v24  ;;  %v1595_v23 = vld [vmem:[%s2144_s1 + $0x420] ss:$8 sps:$4 sm:$0xff]   ;;  %v1365_v24 = vcombine.high %v175_v22, %v175_v22 }
  0x51   :  { %1005 = vmatprep.subr.bf16.mxu0 %v1522_v25  ;;  %v1364_v25 = vcombine.low %v175_v22, %v175_v22 }
  0x53   :  { %924 = vmatpush1.bf16.msra.mxu1 %v1517_v26  ;;  %v31_v26 = vld [vmem:[%s2145_s0 + $0x40] sm:$0xff] }
  0x54   :  { %1006 = vmatpush1.bf16.msra.mxu0 %v1520_v27  ;;  %925 = vmatprep.subr.bf16.mxu1 %v1525_v28  ;;  %v869_v27 = vsel %vm867_vm0, %v1364_v25, 0  ;;  %v40_v28 = vpack.c.bf16 %v31_v26, %v31_v26 }
  0x55   :  { %1007 = vmatprep.subr.bf16.mxu0 %v1528_v29  ;;  %v178_v29 = vlaneseq }
  0x57   :  { %926 = vmatpush1.bf16.msra.mxu1 %v1523_v30 }
  0x58   :  { %1008 = vmatpush1.bf16.msra.mxu0 %v1526_v31  ;;  %927 = vmatprep.subr.bf16.mxu1 %v1531_v32 }
  0x59   :  { %1009 = vmatprep.subr.bf16.mxu0 %v1534_v33  ;;  %v2097_v33 = vshrl.u32 %v178_v29, 7 }
  0x5b   :  { %928 = vmatpush1.bf16.msra.mxu1 %v1529_v35  ;;  %v180_v35 = vsub.s32 0, %v2097_v33  ;;  %v184_v37 = vsub.s32 1, %v2097_v33 }
  0x5c   :  { %1010 = vmatpush1.bf16.msra.mxu0 %v1532_v38  ;;  %929 = vmatprep.subr.bf16.mxu1 %v1537_v39 }
  0x5d   :  { %1011 = vmatprep.subr.bf16.mxu0 %v1540_v41  ;;  %v181_v38 = vrot.slane %v176_v36, %v180_v35  ;;  %v185_v39 = vrot.slane %v176_v36, %v184_v37 }
  0x5f   :  { %930 = vmatpush1.bf16.msra.mxu1 %v1535_v42 }
  0x60   :  { %1012 = vmatpush1.bf16.msra.mxu0 %v1538_v43  ;;  %931 = vmatprep.subr.bf16.mxu1 %v1543_v44 }
  0x61   :  { %1013 = vmatprep.subr.bf16.mxu0 %v1546_v45 }
  0x63   :  { %932 = vmatpush1.bf16.msra.mxu1 %v1541_v46 }
  0x64   :  { %1014 = vmatpush1.bf16.msra.mxu0 %v1544_v47  ;;  %933 = vmatprep.subr.bf16.mxu1 %v1549_v48 }
  0x65   :  { %1015 = vmatprep.subr.bf16.mxu0 %v1552_v49 }
  0x67   :  { %934 = vmatpush1.bf16.msra.mxu1 %v1547_v50 }
  0x68   :  { %1016 = vmatpush1.bf16.msra.mxu0 %v1550_v51  ;;  %935 = vmatprep.subr.bf16.mxu1 %v1555_v52 }
  0x69   :  { %1017 = vmatprep.subr.bf16.mxu0 %v1558_v53 }
  0x6b   :  { %936 = vmatpush1.bf16.msra.mxu1 %v1553_v54  ;;  %v1600_v54 = vld [vmem:[%s2147_s3] ss:$8 sps:$4 sm:$0xff]  }
  0x6c   :  { %1018 = vmatpush1.bf16.msra.mxu0 %v1556_v55  ;;  %937 = vmatprep.subr.bf16.mxu1 %v1561_v56  ;;  %v1602_v55 = vld [vmem:[%s2147_s3 + $0x4] ss:$8 sps:$4 sm:$0xff]   ;;  %v1605_v56 = vld [vmem:[%s2147_s3 + $0x14] ss:$8 sps:$4 sm:$0xff]  }
  0x6d   :  { %1019 = vmatprep.subr.bf16.mxu0 %v1564_v57  ;;  %v1603_v57 = vld [vmem:[%s2147_s3 + $0x10] ss:$8 sps:$4 sm:$0xff]  }
  0x6f   :  { %938 = vmatpush1.bf16.msra.mxu1 %v1559_v58  ;;  %v1608_v58 = vld [vmem:[%s2147_s3 + $0x24] ss:$8 sps:$4 sm:$0xff]  }
  0x70   :  { %1020 = vmatpush1.bf16.msra.mxu0 %v1562_v59  ;;  %939 = vmatprep.subr.bf16.mxu1 %v1567_v60  ;;  %v1606_v60 = vld [vmem:[%s2147_s3 + $0x20] ss:$8 sps:$4 sm:$0xff]  }
  0x71   :  { %1021 = vmatprep.subr.bf16.mxu0 %v1570_v61  ;;  %v1611_v61 = vld [vmem:[%s2147_s3 + $0x34] ss:$8 sps:$4 sm:$0xff]  }
  0x73   :  { %940 = vmatpush1.bf16.msra.mxu1 %v1565_v62  ;;  %v1609_v62 = vld [vmem:[%s2147_s3 + $0x30] ss:$8 sps:$4 sm:$0xff]  }
  0x74   :  { %1022 = vmatpush1.bf16.msra.mxu0 %v1568_v63  ;;  %941 = vmatprep.subr.bf16.mxu1 %v1573_v0 }
  0x75   :  { %1023 = vmatprep.subr.bf16.mxu0 %v1576_v1 }
  0x77   :  { %942 = vmatpush1.bf16.msra.mxu1 %v1571_v2 }
  0x78   :  { %1024 = vmatpush1.bf16.msra.mxu0 %v1574_v3  ;;  %943 = vmatprep.subr.bf16.mxu1 %v1579_v4  ;;  %v1102_v3 = vld [vmem:[%s2148_s4] sm:$0x3] }
  0x79   :  { %1025 = vmatprep.subr.bf16.mxu0 %v1582_v5  ;;  %v1107_v4 = vrot.slane %v1102_v3, %v180_v35 }
  0x7b   :  { %944 = vmatpush1.bf16.msra.mxu1 %v1577_v6 }
  0x7c   :  { %1026 = vmatpush1.bf16.msra.mxu0 %v1580_v7  ;;  %945 = vmatprep.subr.bf16.mxu1 %v1585_v8 }
  0x7d   :  { %1027 = vmatprep.subr.bf16.mxu0 %v1588_v9 }
  0x7f   :  { %946 = vmatpush1.bf16.msra.mxu1 %v1583_v10 }
  0x80   :  { %1028 = vmatpush1.bf16.msra.mxu0 %v1586_v11  ;;  %1161 = vmatprep.subr.bf16.mxu1 %v1602_v55  ;;  %v1111_v11 = vrot.slane %v1102_v3, %v184_v37 }
  0x81   :  { %1038 = vmatprep.subr.bf16.mxu0 %v1591_v14 }
  0x82   :  { %948 = vmatmul.mubr.bf16.vlgmr.msra.gmra.mrb[0].mxu1 %v34_v15 }
  0x83   :  { %1030 = vmatmul.mubr.bf16.vlgmr.msra.gmra.mrb[0].mxu0 %v38_v16  ;;  %1193 = vmatprep.mubr.bf16.mxu1 %v1628_v20 }
  0x84   :  { %1039 = vmatpush1.bf16.msra.mxu0 %v1589_v17  ;;  %1070 = vmatprep.mubr.bf16.mxu0 %v1628_v20 }
  0x85   :  { %1040 = vmatprep.subr.bf16.mxu0 %v1594_v18  ;;  %1162 = vmatpush1.bf16.msra.mxu1 %v1600_v54 }
  0x86   :  { %1163 = vmatprep.subr.bf16.mxu1 %v1605_v56 }
  0x88   :  { %1041 = vmatpush1.bf16.msra.mxu0 %v1592_v19 }
  0x89   :  { %1042 = vmatprep.subr.bf16.mxu0 %v1597_v21  ;;  %1164 = vmatpush1.bf16.msra.mxu1 %v1603_v57 }
  0x8a   :  { %1165 = vmatprep.subr.bf16.mxu1 %v1608_v58 }
  0x8c   :  { %1043 = vmatpush1.bf16.msra.mxu0 %v1595_v23 }
  0x8d   :  { %1366 = vmatprep.subr.msk.bf16.mxu0 %vm867_vm0, %v1365_v24  ;;  %1166 = vmatpush1.bf16.msra.mxu1 %v1606_v60 }
  0x8e   :  { %1167 = vmatprep.subr.bf16.mxu1 %v1611_v61 }
  0x90   :  { %1045 = vmatpush1.bf16.msra.mxu0 %v869_v27 }
  0x91   :  { %1168 = vmatpush1.bf16.msra.mxu1 %v1609_v62 }
  0x93   :  { %1367 = vmatmul.mubr.msk.bf16.vlgmr.msra.gmra.mrb[0].mxu0 %vm863_vm1, %v40_v28 }
 0x155   :  { %v949_v30 = vpop.f32.mrb[0].mxu1 }
 0x156   :  { %v951_v31 = vpop.f32.mrb[1].mxu1  ;;  %v1379_v40 = vadd.f32 %v949_v30, %v181_v38 }
 0x157   :  { %v953_v32 = vpop.f32.mrb[2].mxu1  ;;  %v1381_v41 = vadd.f32 %v951_v31, %v185_v39 }
 0x158   :  { %v954_v34 = vpop.f32.mrb[3].mxu1 }
 0x166   :  { %v1072_v42 = vpop.f32.mrb[0].mxu0 }
 0x167   :  { %v1380_v43 = vadd.f32 %v1379_v40, %v1072_v42  ;;  %v1074_v44 = vpop.f32.mrb[1].mxu0 }
 0x168   :  { %v1382_v45 = vadd.f32 %v1381_v41, %v1074_v44  ;;  %v1076_v46 = vpop.f32.mrb[2].mxu0 }
 0x169   :  { %v1368_v47 = vmul.f32 -1.442695, %v1380_v43  ;;  %v1077_v48 = vpop.f32.mrb[3].mxu0 }
 0x16b   :  { %1612 = vpow2.f32 %v1368_v47 }
 0x16c   :  { %1614 = vtanh.f32 %v1382_v45 }
 0x175   :  { %v1613_v49 = vpop.eup %1612 }
 0x176   :  { %v1082_v50 = vadd.f32 1.0, %v1613_v49  ;;  %v1615_v51 = vpop.eup %1614 }
 0x178   :  { %1616 = vrcp.f32 %v1082_v50 }
 0x182   :  { %v1617_v52 = vpop.eup %1616 }
 0x183   :  { %v1086_v53 = vmul.f32 %v1617_v52, %v1615_v51 }
 0x185   :  { %1618 = vtanh.f32 %v1086_v53 }
 0x18f   :  { %v1619_v59 = vpop.eup %1618 }
 0x190   :  { %1089 = vrot.lane.b32.xlu0 %v1619_v59, %s1629_s30 }
 0x202   :  { %v1090_v63 = vpop.permute.xlu0 %1089 }
 0x203   :  { %v1092_v0 = vmul.f32 %v1617_v52, %v1090_v63 }
 0x205   :  { %v1093_v1 = vpack.c.bf16 %v1092_v0, %v1092_v0 }
 0x207   :  { %1115 = vrot.lane.b32.xlu0 %v1093_v1, %s1629_s30 }
 0x279   :  { %v1116_v2 = vpop.permute.xlu0 %1115 }
 0x27a   :  { %1377 = vmatmul.mubr.msk.bf16.vlgmr.msra.gmra.mrb[4].mxu1 %vm1157_vm2, %v1116_v2 }
 0x34d   :  { %v1195_v5 = vpop.f32.mrb[4].mxu1 }
 0x34e   :  { %v1196_v6 = vadd.f32 %v1195_v5, %v1107_v4  ;;  %v1197_v7 = vpop.f32.mrb[5].mxu1 }
 0x34f   :  { %v1199_v8 = vpop.f32.mrb[6].mxu1  ;;  %v1198_v12 = vadd.f32 %v1197_v7, %v1111_v11 }
 0x350   :  { %v1378_v9 = vmul.f32 -1.442695, %v1196_v6  ;;  %v1200_v10 = vpop.f32.mrb[7].mxu1 }
 0x352   :  { %1620 = vpow2.f32 %v1378_v9 }
 0x353   :  { %1622 = vtanh.f32 %v1198_v12 }
 0x35c   :  { %v1621_v13 = vpop.eup %1620 }
 0x35d   :  { %v1205_v14 = vadd.f32 1.0, %v1621_v13  ;;  %v1623_v15 = vpop.eup %1622 }
 0x35f   :  { %1624 = vrcp.f32 %v1205_v14 }
 0x369   :  { %v1625_v16 = vpop.eup %1624 }
 0x36a   :  { %v1209_v17 = vmul.f32 %v1625_v16, %v1623_v15 }
 0x36c   :  { %1221 = vst.msk [vmem:[%s2149_s6] sm:$0xff] %vm1157_vm2, %v1209_v17  ;;  %1626 = vtanh.f32 %v1209_v17 }
 0x376   :  { %v1627_v18 = vpop.eup %1626 }
 0x377   :  { %1212 = vrot.lane.b32.xlu1 %v1627_v18, %s1629_s30 }
 0x3e9   :  { %v1213_v19 = vpop.permute.xlu1 %1212 }
 0x3ea   :  { %v1215_v20 = vmul.f32 %v1625_v16, %v1213_v19 }
 0x3ec   :  { %1217 = vrot.lane.b32.xlu1 %v1215_v20, %s1629_s30 }
 0x45e   :  { %v1218_v21 = vpop.permute.xlu1 %1217 }
 0x45f   :  { %1220 = vst.msk [vmem:[%s2150_s5] sm:$0xff] %vm1157_vm2, %v1218_v21 }

</bundles_post_ra>
